<compile_context>
chip_gen: v7x
topology: tpu7x:2x2x1
jax: 0.10.0
libtpu: 0.0.40
codegen_flags: <defaults>
</compile_context>

<pallas_src>
import jax
import jax.numpy as jnp
from jax.experimental import pallas as pl
from jax.experimental.pallas import tpu as pltpu


def _round_up(x, m):
    return ((x + m - 1) // m) * m


def _directional_lighting_kernel(params_ref, light_ref, normals_ref, out_ref):
    # light_ref / normals_ref / out_ref: (TR, C) f32, C % 384 == 0.
    # Lanes hold interleaved x,y,z components (flat row-major [B,N,3] view).
    # params_ref: (7,) f32 in SMEM = [intensity, cr, cg, cb, dx, dy, dz].
    C = light_ref.shape[-1]

    inten = params_ref[0]
    cx = inten * params_ref[1]
    cy = inten * params_ref[2]
    cz = inten * params_ref[3]
    dx = params_ref[4]
    dy = params_ref[5]
    dz = params_ref[6]

    n = normals_ref[...]
    l = light_ref[...]

    # Channel id per lane: 0,1,2,0,1,2,... (rows start at multiples of 384,
    # which is a multiple of 3, so triplets never straddle a row).
    lane = jax.lax.broadcasted_iota(jnp.int32, n.shape, 1)
    ch = lane % 3
    m0 = ch == 0
    m1 = ch == 1

    # Per-lane direction / (intensity*color) patterns (scalar selects on VPU).
    dpat = jnp.where(m0, dx, jnp.where(m1, dy, dz))
    spat = jnp.where(m0, cx, jnp.where(m1, cy, cz))

    # Triplet dot product: s[i] = w[i-1] + w[i] + w[i+1] (symmetric rolls, so
    # the result at the middle lane of each triplet is the xyz dot product
    # regardless of the roll sign convention).
    w = n * dpat
    s = w + pltpu.roll(w, 1, axis=1) + pltpu.roll(w, C - 1, axis=1)

    # relu + keep only the valid (middle) lane of each triplet.
    c1 = jnp.where(m1, jnp.maximum(s, 0.0), 0.0)

    # Spread the cosine back over all three lanes of its triplet.
    cosf = c1 + pltpu.roll(c1, 1, axis=1) + pltpu.roll(c1, C - 1, axis=1)

    out_ref[...] = l + spat * cosf


def directional_lighting(light, normals, light_intensity=0.5,
                         light_color=(1, 1, 1), light_direction=(0, 1, 0)):
    """Pallas TPU implementation of srf.directional_lighting.

    light, normals: float32 [B, N, 3]. Returns float32 [B, N, 3].
    """
    assert light.shape == normals.shape and light.shape[-1] == 3
    B, N, _ = light.shape

    # TODO(synk): per-batch [B,3] light_color/light_direction tensors (the
    # SoftRas functional variant) are not supported here; scalars/3-vectors only.
    inten = jnp.reshape(jnp.asarray(light_intensity, jnp.float32), (1,))
    col = jnp.reshape(jnp.asarray(light_color, jnp.float32), (3,))
    dirn = jnp.reshape(jnp.asarray(light_direction, jnp.float32), (3,))
    params = jnp.concatenate([inten, col, dirn], axis=0)  # (7,) f32

    C = 384                       # lcm(3, 128): lane-dense, triplet-aligned rows
    total = B * N * 3

    # Free reshapes of the native row-major layout (no transposes).
    flat_l = jnp.reshape(light.astype(jnp.float32), (-1,))
    flat_n = jnp.reshape(normals.astype(jnp.float32), (-1,))

    padded = _round_up(total, C)
    if padded != total:           # single 1-D pad pass only when needed
        flat_l = jnp.pad(flat_l, (0, padded - total))
        flat_n = jnp.pad(flat_n, (0, padded - total))
    R = padded // C
    l2 = flat_l.reshape(R, C)
    n2 = flat_n.reshape(R, C)

    # Row tile: multiple of 8 (full sublane packing).  TR=2048 -> 3 MiB/buffer,
    # ~18 MiB total double-buffered (fits the 32 MiB vmem limit everywhere).
    # Split into >=2 grid steps when possible so v7x's 2 TensorCores both work.
    if R <= 8:
        TR = R                    # block equals full dim (allowed)
    else:
        TR = min(2048, _round_up(R, 8))
        if TR >= R:
            TR = _round_up(pl.cdiv(R, 2), 8)
    num_blocks = pl.cdiv(R, TR)   # ragged last block handled by the pipeline

    out2d = pl.pallas_call(
        _directional_lighting_kernel,
        out_shape=jax.ShapeDtypeStruct((R, C), jnp.float32),
        grid=(num_blocks,),
        in_specs=[
            pl.BlockSpec(memory_space=pltpu.MemorySpace.SMEM),   # params
            pl.BlockSpec((TR, C), lambda i: (i, 0)),             # light
            pl.BlockSpec((TR, C), lambda i: (i, 0)),             # normals
        ],
        out_specs=pl.BlockSpec((TR, C), lambda i: (i, 0)),
        compiler_params=pltpu.CompilerParams(
            dimension_semantics=("parallel",),
            vmem_limit_bytes=32 * 1024 * 1024,
        ),
    )(params, l2, n2)

    out_flat = out2d.reshape(-1)
    if padded != total:
        out_flat = out_flat[:total]
    return out_flat.reshape(B, N, 3)


class DirectionalLighting:
    """Mirror of the PyTorch nn.Module (forward only)."""

    def __init__(self, light_intensity=0.5, light_color=(1, 1, 1),
                 light_direction=(0, 1, 0)):
        self.light_intensity = light_intensity
        self.light_color = light_color
        self.light_direction = light_direction

    def __call__(self, light, normals):
        return directional_lighting(light, normals, self.light_intensity,
                                    self.light_color, self.light_direction)


def _reference(light, normals, intensity, color, direction):
    color = jnp.asarray(color, jnp.float32).reshape(1, 1, 3)
    direction = jnp.asarray(direction, jnp.float32).reshape(1, 1, 3)
    cosine = jnp.maximum(jnp.sum(normals * direction, axis=2), 0.0)
    return light + intensity * (color * cosine[:, :, None])


if __name__ == "__main__":
    key = jax.random.PRNGKey(0)

    intensity = 0.5
    color = (1.0, 0.5, 0.25)
    direction = (0.2, 0.9, -0.4)       # asymmetric: catches channel mix-ups
    module = DirectionalLighting(light_intensity=intensity,
                                 light_color=color,
                                 light_direction=direction)

    # (2, 1000): exercises the pad + multi-block path; (2, 64): exact fit, 1 block.
    for (B, N) in [(2, 1000), (2, 64)]:
        k1, k2, key = jax.random.split(key, 3)
        light = jax.random.uniform(k1, (B, N, 3), dtype=jnp.float32)
        normals = jax.random.normal(k2, (B, N, 3), dtype=jnp.float32)
        normals = normals / jnp.linalg.norm(normals, axis=-1, keepdims=True)

        out = jax.block_until_ready(module(light, normals))
        ref = _reference(light, normals, intensity, color, direction)

        assert out.shape == (B, N, 3)
        assert jnp.allclose(out, ref, atol=1e-5, rtol=1e-5), (B, N)

    print("KERNEL_OK")
</pallas_src>

<mosaic_0001>
module attributes {stable_mosaic.version = 11 : i64} {
  func.func @_directional_lighting_kernel(%arg0: i32, %arg1: memref<7xf32, #tpu.memory_space<smem>>, %arg2: memref<8x384xf32, #tpu.memory_space<vmem>>, %arg3: memref<8x384xf32, #tpu.memory_space<vmem>>, %arg4: memref<8x384xf32, #tpu.memory_space<vmem>>) attributes {dimension_semantics = [#tpu.dimension_semantics<parallel>], iteration_bounds = array<i64: 2>, scalar_prefetch = 0 : i64, scratch_operands = 0 : i64, tpu.core_type = #tpu.core_type<tc>, window_params = [{transform_indices = @transform_0, window_bounds = array<i64: 7>}, {transform_indices = @transform_1, window_bounds = array<i64: 8, 384>}, {transform_indices = @transform_2, window_bounds = array<i64: 8, 384>}, {transform_indices = @transform_3, window_bounds = array<i64: 8, 384>}]} {
    %c0 = arith.constant 0 : index
    %0 = memref.load %arg1[%c0] : memref<7xf32, #tpu.memory_space<smem>>
    %c1 = arith.constant 1 : index
    %1 = memref.load %arg1[%c1] : memref<7xf32, #tpu.memory_space<smem>>
    %2 = arith.mulf %0, %1 : f32
    %c2 = arith.constant 2 : index
    %3 = memref.load %arg1[%c2] : memref<7xf32, #tpu.memory_space<smem>>
    %4 = arith.mulf %0, %3 : f32
    %c3 = arith.constant 3 : index
    %5 = memref.load %arg1[%c3] : memref<7xf32, #tpu.memory_space<smem>>
    %6 = arith.mulf %0, %5 : f32
    %c4 = arith.constant 4 : index
    %7 = memref.load %arg1[%c4] : memref<7xf32, #tpu.memory_space<smem>>
    %c5 = arith.constant 5 : index
    %8 = memref.load %arg1[%c5] : memref<7xf32, #tpu.memory_space<smem>>
    %c6 = arith.constant 6 : index
    %9 = memref.load %arg1[%c6] : memref<7xf32, #tpu.memory_space<smem>>
    %c0_0 = arith.constant 0 : index
    %c0_1 = arith.constant 0 : index
    %10 = vector.load %arg3[%c0_0, %c0_1] : memref<8x384xf32, #tpu.memory_space<vmem>>, vector<8x384xf32>
    %c0_2 = arith.constant 0 : index
    %c0_3 = arith.constant 0 : index
    %11 = vector.load %arg2[%c0_2, %c0_3] : memref<8x384xf32, #tpu.memory_space<vmem>>, vector<8x384xf32>
    %12 = tpu.iota {dimensions = array<i32: 1>} : vector<8x384xi32>
    %c3_i32 = arith.constant 3 : i32
    %c0_i32 = arith.constant 0 : i32
    %13 = arith.cmpi eq, %c3_i32, %c0_i32 : i32
    %c1_i32 = arith.constant 1 : i32
    %14 = arith.select %13, %c1_i32, %c3_i32 : i32
    %15 = vector.broadcast %14 : i32 to vector<8x384xi32>
    %16 = arith.remsi %12, %15 : vector<8x384xi32>
    %c0_i32_4 = arith.constant 0 : i32
    %17 = vector.broadcast %c0_i32_4 : i32 to vector<8x384xi32>
    %18 = arith.cmpi ne, %16, %17 : vector<8x384xi32>
    %c0_i32_5 = arith.constant 0 : i32
    %19 = vector.broadcast %c0_i32_5 : i32 to vector<8x384xi32>
    %20 = arith.cmpi slt, %16, %19 : vector<8x384xi32>
    %c0_i32_6 = arith.constant 0 : i32
    %21 = arith.cmpi slt, %14, %c0_i32_6 : i32
    %22 = vector.broadcast %21 : i1 to vector<8x384xi1>
    %23 = vector.broadcast %22 : vector<8x384xi1> to vector<8x384xi1>
    %24 = arith.xori %20, %23 : vector<8x384xi1>
    %25 = arith.andi %24, %18 : vector<8x384xi1>
    %26 = vector.broadcast %14 : i32 to vector<8x384xi32>
    %27 = arith.addi %16, %26 : vector<8x384xi32>
    %28 = arith.select %25, %27, %16 : vector<8x384xi1>, vector<8x384xi32>
    %c0_i32_7 = arith.constant 0 : i32
    %29 = vector.broadcast %c0_i32_7 : i32 to vector<8x384xi32>
    %30 = arith.cmpi eq, %28, %29 : vector<8x384xi32>
    %c1_i32_8 = arith.constant 1 : i32
    %31 = vector.broadcast %c1_i32_8 : i32 to vector<8x384xi32>
    %32 = arith.cmpi eq, %28, %31 : vector<8x384xi32>
    %33 = vector.broadcast %8 : f32 to vector<8x384xf32>
    %34 = vector.broadcast %9 : f32 to vector<8x384xf32>
    %35 = arith.select %32, %33, %34 : vector<8x384xi1>, vector<8x384xf32>
    %36 = vector.broadcast %7 : f32 to vector<8x384xf32>
    %37 = arith.select %30, %36, %35 : vector<8x384xi1>, vector<8x384xf32>
    %38 = vector.broadcast %4 : f32 to vector<8x384xf32>
    %39 = vector.broadcast %6 : f32 to vector<8x384xf32>
    %40 = arith.select %32, %38, %39 : vector<8x384xi1>, vector<8x384xf32>
    %41 = vector.broadcast %2 : f32 to vector<8x384xf32>
    %42 = arith.select %30, %41, %40 : vector<8x384xi1>, vector<8x384xf32>
    %43 = arith.mulf %10, %37 : vector<8x384xf32>
    %c1_i32_9 = arith.constant 1 : i32
    %44 = tpu.dynamic_rotate %43 by %c1_i32_9 dim 1 : vector<8x384xf32>, i32 -> vector<8x384xf32>
    %45 = arith.addf %43, %44 : vector<8x384xf32>
    %c383_i32 = arith.constant 383 : i32
    %46 = tpu.dynamic_rotate %43 by %c383_i32 dim 1 : vector<8x384xf32>, i32 -> vector<8x384xf32>
    %47 = arith.addf %45, %46 : vector<8x384xf32>
    %cst = arith.constant 0.000000e+00 : f32
    %48 = vector.broadcast %cst : f32 to vector<8x384xf32>
    %49 = arith.maximumf %47, %48 : vector<8x384xf32>
    %cst_10 = arith.constant 0.000000e+00 : f32
    %50 = vector.broadcast %cst_10 : f32 to vector<8x384xf32>
    %51 = arith.select %32, %49, %50 : vector<8x384xi1>, vector<8x384xf32>
    %c1_i32_11 = arith.constant 1 : i32
    %52 = tpu.dynamic_rotate %51 by %c1_i32_11 dim 1 : vector<8x384xf32>, i32 -> vector<8x384xf32>
    %53 = arith.addf %51, %52 : vector<8x384xf32>
    %c383_i32_12 = arith.constant 383 : i32
    %54 = tpu.dynamic_rotate %51 by %c383_i32_12 dim 1 : vector<8x384xf32>, i32 -> vector<8x384xf32>
    %55 = arith.addf %53, %54 : vector<8x384xf32>
    %56 = arith.mulf %42, %55 : vector<8x384xf32>
    %57 = arith.addf %11, %56 : vector<8x384xf32>
    %c0_13 = arith.constant 0 : index
    %c0_14 = arith.constant 0 : index
    %58 = vector.load %arg4[%c0_13, %c0_14] : memref<8x384xf32, #tpu.memory_space<vmem>>, vector<8x384xf32>
    tpu.vector_store %arg4[%c0_13, %c0_14], %57 {strides = array<i32>} : memref<8x384xf32, #tpu.memory_space<vmem>>, vector<8x384xf32>,
    return
  }
  func.func @transform_0(%arg0: i32) -> i32 {
    %c0_i32 = arith.constant 0 : i32
    %c0_i32_0 = arith.constant 0 : i32
    return %c0_i32 : i32
  }
  func.func @transform_1(%arg0: i32) -> (i32, i32) {
    %c0_i32 = arith.constant 0 : i32
    %c0_i32_0 = arith.constant 0 : i32
    return %arg0, %c0_i32 : i32, i32
  }
  func.func @transform_2(%arg0: i32) -> (i32, i32) {
    %c0_i32 = arith.constant 0 : i32
    %c0_i32_0 = arith.constant 0 : i32
    return %arg0, %c0_i32 : i32, i32
  }
  func.func @transform_3(%arg0: i32) -> (i32, i32) {
    %c0_i32 = arith.constant 0 : i32
    %c0_i32_0 = arith.constant 0 : i32
    return %arg0, %c0_i32 : i32, i32
  }
}

</mosaic_0001>

<bundles_post_ra>
// kernel: tpu_custom_call.1
= control target key start
LH: loop header
LB: loop body
LE: loop exit
PB: predicated region body
PF: predicated region fallthrough
CT: control target
= control target key end

     0   :  { %8 = vsyncpa [#allocation5], 0  ;;  %s1125_s0 = inlined_call_operand.hbm [shape: f32[7], index: 0, kind: input, shape index: {}]   ;;  %s1126_s1 = inlined_call_operand.hbm [shape: f32[16,384], index: 1, kind: input, shape index: {}]   ;;  %s1127_s2 = inlined_call_operand.hbm [shape: f32[16,384], index: 2, kind: input, shape index: {}]   ;;  %s1128_s3 = inlined_call_operand.hbm [shape: f32[16,384], index: 3, kind: output, shape index: {}]  }
   0x1   :  { %9 = vsyncpa [#allocation3], 0 }
   0x2   :  { %11 = vsyncpa [#allocation3 + $0x1], 0 }
   0x3   :  { %12 = vsyncpa [#allocation8], 0 }
   0x4   :  { %14 = vsyncpa [#allocation8 + $0x1], 0 }
   0x5   :  { %15 = vsyncpa [#allocation4], 0 }
   0x6   :  { %17 = vsyncpa [#allocation4 + $0x1], 0  ;;  %s785_s12 = smov 0   ;;  %s787_s13 = smov 0  }
   0x7   :  { %s789_s14 = smov 0   ;;  %s791_s15 = smov 0  }
   0x8 LB: > { %s806_s16 = sadd.s32 4294967295, %s757_s15   ;;  %s517_s17 = sadd.s32 4294967294, %s757_s15   ;;  %s757_s15 = sphi %s791_s15, %s1149_s15   ;;  %s753_s14 = sphi %s789_s14, %s1148_s14   ;;  %s749_s13 = sphi %s787_s13, %s1147_s13   ;;  %s745_s12 = sphi %s785_s12, %s1146_s12  }
   0x9   : > { %s810_s18 = sadd.s32 1, %s757_s15   ;;  %s51_s19 = sadd.s32 1, %s753_s14 }
   0xa   : > { %s48_s20 = ssub.s32 %s757_s15, %s810_s18  ;;  %p58_p0 = scmp.ne.s32.totalorder %s753_s14, %s749_s13 }
   0xb   : > { %p49_p1 = scmp.eq.s32.totalorder %s48_s20, 0  ;;  %p64_p2 = scmp.ne.s32.totalorder %s749_s13, %s745_s12 }
   0xc   : > { %p1129_p3 = scmp.eq.s32.totalorder %s806_s16, 0  ;;  %p114_p4 = scmp.eq.s32.totalorder %s806_s16, 1 }
   0xd   : > { %s822_s21 = scalar_select %p49_p1, %s753_s14, %s51_s19  }
   0xe   : > { %p826_p5 = por %p1129_p3, %p64_p2  ;;  %p833_p6 = por %p114_p4, %p58_p0 }
   0xf   : > { %p120_p7 = scmp.eq.s32.totalorder %s517_s17, 1  ;;  %p518_p8 = scmp.ge.s32.totalorder %s757_s15, 1 }
  0x10   : > { %s1133_s22 = scalar_select %p826_p5, 1, 0 }
  0x11   : > { %s1134_s23 = scalar_select %p833_p6, 1, 0 }
  0x12   : > { %p127_p9 = scmp.lt.s32.totalorder %s757_s15, 3  ;;  %p839_p10 = por %p120_p7, %p64_p2 }
  0x13   : > { %p59_p13 = scmp.eq.s32.totalorder %s757_s15, 0  ;;  %p572_p1 = scmp.lt.s32.totalorder %s757_s15, 2 }
  0x14   : > { %s1135_s24 = scalar_select %p839_p10, 1, 0 }
  0x15   : > { %p843_p11 = pnand %p518_p8, %p127_p9  ;;  %s853_s26 = sand.u32 1, %s753_s14  }
  0x16   : > { %p60_p3 = por %p59_p13, %p58_p0  ;;  %p1137_p6 = scmp.eq.s32.totalorder %s806_s16, 0 }
  0x17   : > { %s1136_s25 = scalar_select %p843_p11, 1, 0 }
  0x18   : > { %p556_p4 = pneg %p843_p11  ;;  %s534_s27 = smul.u32 24, %s853_s26 }
  0x19   : > { %s535_s28 = smul.u32 384, %s757_s15  ;;  %p862_p7 = pnand %p572_p1, %p60_p3 }
  0x1a   : > { %p557_p2 = pnand %p556_p4, %p1137_p6  ;;  %s610_s5 = scalar_lea.hbm %s1125_s0, 16 }
  0x1b   : > { %p611_p8 = scmp.ne.s32.totalorder %s1125_s0, %s610_s5  ;;  %p617_p0 = scmp.lt.u32.totalorder %s610_s5, %s1125_s0 }
  0x1c   : > { %p612_p9 = pneg %p557_p2 }
  0x1e   : > { %p613_p12 = pnand %p612_p9, %p611_p8 }
  0x20   : > { %p614_p10 = pneg %p613_p12 }
  0x22   : > { %p619_p6 = pnand %p617_p0, %p614_p10 }
  0x24   : > { %622 = shalt.err (!%p619_p6)
}
  0x25   : > { %s759_s10 = smov [#allocation2]   ;;  %s883_s30 = scalar_lea.hbm %s1126_s1, %s535_s28 }
  0x26   : > { %559 = dma.hbm_to_smem (!%p557_p2), %s1125_s0, 16, %s759_s10, [#allocation5]  }
  0x27   : > { %s153_s4 = scalar_lea.vmem [#allocation6], %s534_s27  ;;  %s150_s6 = scalar_lea.sflag [#allocation3], %s853_s26 }
  0x28   : > { %s161_s5 = sshll.u32 %s153_s4, 4  ;;  %s623_s7 = scalar_lea.hbm %s883_s30, 384  ;;  %s887_s5 = int_to_ptr.vmem [resolvable:$true] %s161_s5 }
  0x29   : > { %p624_p3 = scmp.ne.s32.totalorder %s883_s30, %s623_s7  ;;  %p625_p10 = pneg %p862_p7 }
  0x2a   : > { %s628_s10 = scalar_lea.hbm %s1126_s1, 768  ;;  %p629_p1 = scmp.lt.u32.totalorder %s883_s30, %s1126_s1 }
  0x2b   : > { %p626_p12 = pnand %p625_p10, %p624_p3  ;;  %p630_p4 = scmp.lt.u32.totalorder %s628_s10, %s623_s7 }
  0x2c   : > { %p632_p8 = scmp.lt.u32.totalorder %s623_s7, %s883_s30 }
  0x2d   : > { %p627_p13 = pneg %p626_p12  ;;  %p631_p2 = por %p630_p4, %p629_p1 }
  0x2f   : > { %p633_p9 = por %p632_p8, %p631_p2 }
  0x31   : > { %p634_p0 = pnand %p633_p9, %p627_p13 }
  0x33   : > { %637 = shalt.err (!%p634_p0)
}
  0x34   : > { %s638_s19 = scalar_lea.vmem %s887_s5, 384  ;;  %s760_s20 = smov [#allocation6]  }
  0x35   : > { %p639_p6 = scmp.ne.s32.totalorder %s887_s5, %s638_s19  ;;  %s643_s4 = sshll.u32 %s760_s20, 4  ;;  %s644_s4 = int_to_ptr.vmem [resolvable:$false] %s643_s4 }
  0x36   : > { %s645_s8 = scalar_lea.vmem %s644_s4, 768  ;;  %p646_p5 = scmp.lt.s32.totalorder %s887_s5, %s644_s4 }
  0x37   : > { %p641_p3 = pnand %p639_p6, %p625_p10  ;;  %p647_p1 = scmp.lt.s32.totalorder %s645_s8, %s638_s19 }
  0x39   : > { %p642_p12 = pneg %p641_p3  ;;  %p648_p4 = por %p647_p1, %p646_p5 }
  0x3b   : > { %p649_p2 = pnand %p648_p4, %p642_p12 }
  0x3d   : > { %652 = shalt.err (!%p649_p2)
}
  0x3e   : > { %563 = dma.hbm_to_vmem [thread:$0]  (!%p862_p7), %s883_s30, 384, %s887_s5, %s150_s6  }
  0x3f   : > { %s920_s10 = scalar_lea.hbm %s1127_s2, %s535_s28  ;;  %s172_s11 = scalar_lea.vmem [#allocation7], %s534_s27 }
  0x40   : > { %s180_s17 = sshll.u32 %s172_s11, 4  ;;  %s169_s19 = scalar_lea.sflag [#allocation8], %s853_s26  ;;  %s181_s17 = int_to_ptr.vmem [resolvable:$true] %s180_s17 }
  0x41   : > { %s653_s20 = scalar_lea.hbm %s920_s10, 384  ;;  %s658_s28 = scalar_lea.hbm %s1127_s2, 768 }
  0x42   : > { %p654_p5 = scmp.ne.s32.totalorder %s920_s10, %s653_s20  ;;  %p659_p9 = scmp.lt.u32.totalorder %s920_s10, %s1127_s2 }
  0x43   : > { %p660_p0 = scmp.lt.u32.totalorder %s658_s28, %s653_s20  ;;  %p662_p3 = scmp.lt.u32.totalorder %s653_s20, %s920_s10 }
  0x44   : > { %p656_p13 = pnand %p654_p5, %p625_p10 }
  0x45   : > { %p661_p6 = por %p660_p0, %p659_p9 }
  0x46   : > { %p657_p8 = pneg %p656_p13 }
  0x47   : > { %p663_p12 = por %p662_p3, %p661_p6 }
  0x49   : > { %p664_p1 = pnand %p663_p12, %p657_p8 }
  0x4b   : > { %667 = shalt.err (!%p664_p1)
}
  0x4c   : > { %s668_s26 = scalar_lea.vmem %s181_s17, 384  ;;  %s761_s27 = smov [#allocation7]  }
  0x4d   : > { %p669_p4 = scmp.ne.s32.totalorder %s181_s17, %s668_s26  ;;  %s673_s8 = sshll.u32 %s761_s27, 4  ;;  %s674_s8 = int_to_ptr.vmem [resolvable:$false] %s673_s8 }
  0x4e   : > { %s675_s7 = scalar_lea.vmem %s674_s8, 768  ;;  %p676_p13 = scmp.lt.s32.totalorder %s181_s17, %s674_s8 }
  0x4f   : > { %p671_p2 = pnand %p669_p4, %p625_p10  ;;  %p677_p11 = scmp.lt.s32.totalorder %s675_s7, %s668_s26 }
  0x51   : > { %p672_p5 = pneg %p671_p2  ;;  %p678_p0 = por %p677_p11, %p676_p13 }
  0x53   : > { %p679_p9 = pnand %p678_p0, %p672_p5 }
  0x55   : > { %682 = shalt.err (!%p679_p9)
}
  0x56   : > { %566 = dma.hbm_to_vmem [thread:$0]  (!%p862_p7), %s920_s10, 384, %s181_s17, %s169_s19  }
  0x57   : > { %p1139_p8 = scmp.ne.s32.totalorder %s1136_s25, 0 }
  0x58   : > { %p1140_p6 = scmp.eq.s32.totalorder (!%p1139_p8), %s806_s16, 0 }
  0x59   : > { %189 = sbr.rel (%p1139_p8) target bundleno = 401 (0x191), region = 32 }
  0x60   : > { %728 = dma.done.wait (%p1140_p6), [#allocation5], 16   ;;  %p1141_p10 = pmov %p1140_p6 }
  0x61   : > { %s951_s9 = sand.u32 1, %s749_s13   ;;  %p1142_p11 = scmp.ne.s32.totalorder %s1133_s22, 0 }
  0x62   : > { %730 = vsyncadd (%p1141_p10), [#allocation5], 4294967280  ;;  %s954_s11 = smul.u32 24, %s951_s9  ;;  %s196_s29 = scalar_lea.sflag [#allocation3], %s951_s9 }
  0x64   : > { %s958_s10 = scalar_lea.vmem [#allocation6], %s954_s11 }
  0x65   : > { %732 = dma.done.wait (%p1142_p11), %s196_s29, 384  }
  0x66   : > { %734 = vsyncadd (%p1142_p11), %s196_s29, 4294966912  ;;  %s205_s25 = scalar_lea.sflag [#allocation8], %s951_s9  ;;  %s966_s17 = scalar_lea.vmem [#allocation7], %s954_s11 }
  0x67   : > { %736 = dma.done.wait (%p1142_p11), %s205_s25, 384  }
  0x68   : > { %738 = vsyncadd (%p1142_p11), %s205_s25, 4294966912 }
  0x69   : > { %213 = sfence }
  0x6a   : > { %v253_v0 = vlaneseq  ;;  %s528_s19 = sld [smem:[#allocation2 + $0x4]]  ;;  %s529_s20 = sld [smem:[#allocation2 + $0x5]]  ;;  %v247_v25 = vld [vmem:[%s966_s17] sm:$0xff]  ;;  %v249_v30 = vld [vmem:[%s966_s17 + $0x10] sm:$0xff]  ;;  %v248_v35 = vld [vmem:[%s966_s17 + $0x8] sm:$0xff] }
  0x6b   : > { %s530_s30 = sld [smem:[#allocation2 + $0x6]]  ;;  %s762_s22 = smov 127  }
  0x6c   : > { %v972_v1 = vand.u32 127, %v253_v0  ;;  %s763_s5 = smov 1   ;;  %s237_s28 = sld [smem:[#allocation2]] }
  0x6d   : > { %s526_s6 = sld [smem:[#allocation2 + $0x2]]  ;;  %s527_s4 = sld [smem:[#allocation2 + $0x3]] }
  0x6e   : > { %v975_v2 = vmul.u32.u64.low 2863311531, %v972_v1  ;;  %v976_v3 = vmul.u32.u64.high 2863311531, %v972_v1, %v975_v2  ;;  %v256_v4 = vadd.s32 256, %v972_v1  ;;  %v255_v5 = vadd.s32 128, %v972_v1  ;;  %s525_s26 = sld [smem:[#allocation2 + $0x1]]  ;;  %s545_s29 = smul.u32 384, %s806_s16 }
  0x6f   : > { %vm338_vm15 = vcmp.lt.s32.totalorder %v972_v1, 1  ;;  %s236_s25 = scalar_lea.vmem [#allocation9], %s954_s11  ;;  %s398_s16 = scalar_lea.sflag [#allocation4], %s951_s9 }
  0x70   : > { %v980_v6 = vmul.u32.u64.low 2863311531, %v256_v4  ;;  %v981_v7 = vmul.u32.u64.high 2863311531, %v256_v4, %v980_v6  ;;  %v983_v8 = vmul.u32.u64.low 2863311531, %v255_v5  ;;  %v984_v9 = vmul.u32.u64.high 2863311531, %v255_v5, %v983_v8  ;;  %s412_s17 = sshll.u32 %s236_s25, 4  ;;  %p1143_p3 = scmp.ne.s32.totalorder %s1134_s23, 0  ;;  %s1083_s17 = int_to_ptr.vmem [resolvable:$true] %s412_s17 }
  0x71   : > { %v263_v10 = vshrl.u32 %v976_v3, 1  ;;  %v311_v19 = vstv %s529_s20  ;;  %v312_v20 = vstv %s530_s30  ;;  %v316_v21 = vstv %s528_s19  ;;  %s1081_s30 = scalar_lea.hbm %s1128_s3, %s545_s29  ;;  %s683_s11 = scalar_lea.vmem %s1083_s17, 384 }
  0x72   : > { %v285_v12 = vshrl.u32 %v981_v7, 1  ;;  %v274_v13 = vshrl.u32 %v984_v9, 1  ;;  %p684_p7 = scmp.ne.s32.totalorder %s1083_s17, %s683_s11 }
  0x73   : > { %v264_v11 = vmul.u32 3, %v263_v10  ;;  %s241_s27 = smul.f32 %s526_s6, %s237_s28 }
  0x74   : > { %v286_v15 = vmul.u32 3, %v285_v12  ;;  %v275_v16 = vmul.u32 3, %v274_v13  ;;  %s243_s8 = smul.f32 %s527_s4, %s237_s28  ;;  %p685_p12 = pnand %p684_p7, %p1143_p3 }
  0x75   : > { %v265_v14 = vsub.s32 %v972_v1, %v264_v11  ;;  %s239_s7 = smul.f32 %s525_s26, %s237_s28  ;;  %v320_v3 = vstv %s241_s27 }
  0x76   : > { %v287_v18 = vsub.s32 %v256_v4, %v286_v15  ;;  %v276_v22 = vsub.s32 %v255_v5, %v275_v16  ;;  %v321_v4 = vstv %s243_s8  ;;  %p686_p1 = pneg %p685_p12 }
  0x77   : > { %vm290_vm0 = vcmp.ne.s32.totalorder %v265_v14, 0  ;;  %vm293_vm1 = vcmp.lt.s32.totalorder %v265_v14, 0  ;;  %v299_v17 = vadd.s32 3, %v265_v14  ;;  %v325_v8 = vstv %s239_s7 }
  0x78   : > { %vm296_vm2 = vmand %vm293_vm1, %vm290_vm0  ;;  %vm292_vm3 = vcmp.ne.s32.totalorder %v287_v18, 0  ;;  %vm295_vm4 = vcmp.lt.s32.totalorder %v287_v18, 0  ;;  %v301_v24 = vadd.s32 3, %v287_v18  ;;  %vm291_vm8 = vcmp.ne.s32.totalorder %v276_v22, 0 }
  0x79   : > { %v990_v23 = vsel %vm296_vm2, %v299_v17, %v265_v14  ;;  %vm298_vm7 = vmand %vm295_vm4, %vm292_vm3  ;;  %vm294_vm9 = vcmp.lt.s32.totalorder %v276_v22, 0  ;;  %v300_v28 = vadd.s32 3, %v276_v22  ;;  %vm351_vm0 = vcmp.lt.s32.totalorder %v972_v1, 127 }
  0x7a   : > { %vm305_vm5 = vcmp.eq.s32.totalorder %v990_v23, 0  ;;  %vm308_vm6 = vcmp.eq.s32.totalorder %v990_v23, 1  ;;  %v997_v27 = vsel %vm298_vm7, %v301_v24, %v287_v18  ;;  %vm297_vm10 = vmand %vm294_vm9, %vm291_vm8 }
  0x7b   : > { %v313_v26 = vsel %vm308_vm6, %v311_v19, %v312_v20  ;;  %vm307_vm11 = vcmp.eq.s32.totalorder %v997_v27, 0  ;;  %vm310_vm12 = vcmp.eq.s32.totalorder %v997_v27, 1  ;;  %v1006_v33 = vsel %vm297_vm10, %v300_v28, %v276_v22 }
  0x7c   : > { %v317_v29 = vsel %vm305_vm5, %v316_v21, %v313_v26  ;;  %v315_v32 = vsel %vm310_vm12, %v311_v19, %v312_v20  ;;  %vm306_vm13 = vcmp.eq.s32.totalorder %v1006_v33, 0  ;;  %vm309_vm14 = vcmp.eq.s32.totalorder %v1006_v33, 1 }
  0x7d   : > { %v329_v31 = vmul.f32 %v317_v29, %v247_v25  ;;  %v319_v34 = vsel %vm307_vm11, %v316_v21, %v315_v32  ;;  %v314_v37 = vsel %vm309_vm14, %v311_v19, %v312_v20  ;;  %v322_v7 = vsel %vm308_vm6, %v320_v3, %v321_v4  ;;  %v250_v29 = vld [vmem:[%s958_s10] sm:$0xff] }
  0x7e   : > { %v331_v36 = vmul.f32 %v319_v34, %v249_v30  ;;  %v318_v38 = vsel %vm306_vm13, %v316_v21, %v314_v37  ;;  %v323_v12 = vsel %vm309_vm14, %v320_v3, %v321_v4  ;;  %v324_v13 = vsel %vm310_vm12, %v320_v3, %v321_v4  ;;  %v251_v30 = vld [vmem:[%s958_s10 + $0x8] sm:$0xff] }
  0x7f   : > { %345 = vrot.lane.b32.xlu1 %v329_v31, %s762_s22  ;;  %332 = vrot.lane.b32.xlu0 %v329_v31, %s763_s5  ;;  %v330_v39 = vmul.f32 %v318_v38, %v248_v35  ;;  %v326_v14 = vsel %vm305_vm5, %v325_v8, %v322_v7  ;;  %v327_v20 = vsel %vm306_vm13, %v325_v8, %v323_v12 }
  0x80   : > { %v328_v22 = vsel %vm307_vm11, %v325_v8, %v324_v13 }
  0x83   : > { %336 = vrot.lane.b32.xlu1 %v331_v36, %s763_s5  ;;  %334 = vrot.lane.b32.xlu0 %v330_v39, %s763_s5 }
  0x87   : > { %349 = vrot.lane.b32.xlu1 %v331_v36, %s762_s22  ;;  %347 = vrot.lane.b32.xlu0 %v330_v39, %s762_s22 }
  0xf1   : > { %v346_v40 = vpop.permute.xlu1 %345  ;;  %v333_v41 = vpop.permute.xlu0 %332 }
  0xf5   : > { %v337_v42 = vpop.permute.xlu1 %336  ;;  %v335_v43 = vpop.permute.xlu0 %334 }
  0xf6   : > { %v341_v44 = vsel %vm338_vm15, %v337_v42, %v333_v41  ;;  %v339_v45 = vsel %vm338_vm15, %v335_v43, %v337_v42  ;;  %v340_v46 = vsel %vm338_vm15, %v333_v41, %v335_v43 }
  0xf7   : > { %v342_v47 = vadd.f32 %v341_v44, %v329_v31  ;;  %v343_v48 = vadd.f32 %v340_v46, %v330_v39  ;;  %v344_v49 = vadd.f32 %v339_v45, %v331_v36  ;;  %v252_v31 = vld [vmem:[%s958_s10 + $0x10] sm:$0xff]  ;;  %s764_s10 = smov [#allocation9]  }
  0xf9   : > { %v350_v50 = vpop.permute.xlu1 %349  ;;  %v348_v51 = vpop.permute.xlu0 %347 }
  0xfa   : > { %v354_v52 = vsel %vm351_vm0, %v350_v50, %v346_v40  ;;  %v352_v53 = vsel %vm351_vm0, %v348_v51, %v350_v50  ;;  %v353_v54 = vsel %vm351_vm0, %v346_v40, %v348_v51 }
  0xfb   : > { %v357_v55 = vadd.f32 %v354_v52, %v344_v49  ;;  %v355_v56 = vadd.f32 %v353_v54, %v342_v47  ;;  %v356_v57 = vadd.f32 %v352_v53, %v343_v48 }
  0xfd   : > { %v358_v58 = vmax.f32 %v355_v56, 0.0  ;;  %v359_v59 = vmax.f32 %v356_v57, 0.0  ;;  %v360_v60 = vmax.f32 %v357_v55, 0.0 }
  0xff   : > { %v361_v61 = vsel %vm308_vm6, %v358_v58, 0.0  ;;  %v362_v62 = vsel %vm309_vm14, %v359_v59, 0.0  ;;  %v363_v63 = vsel %vm310_vm12, %v360_v60, 0.0 }
 0x100   : > { %364 = vrot.lane.b32.xlu0 %v361_v61, %s763_s5  ;;  %366 = vrot.lane.b32.xlu1 %v362_v62, %s763_s5 }
 0x104   : > { %368 = vrot.lane.b32.xlu0 %v363_v63, %s763_s5  ;;  %376 = vrot.lane.b32.xlu1 %v361_v61, %s762_s22 }
 0x108   : > { %378 = vrot.lane.b32.xlu0 %v362_v62, %s762_s22  ;;  %380 = vrot.lane.b32.xlu1 %v363_v63, %s762_s22  ;;  %s687_s22 = sshll.u32 %s764_s10, 4  ;;  %s688_s22 = int_to_ptr.vmem [resolvable:$false] %s687_s22 }
 0x109   : > { %s689_s5 = scalar_lea.vmem %s688_s22, 768  ;;  %p690_p4 = scmp.lt.s32.totalorder %s1083_s17, %s688_s22 }
 0x10a   : > { %p691_p2 = scmp.lt.s32.totalorder %s689_s5, %s683_s11 }
 0x10c   : > { %p692_p5 = por %p691_p2, %p690_p4 }
 0x10e   : > { %p693_p13 = pnand %p692_p5, %p686_p1 }
 0x172   : > { %v365_v0 = vpop.permute.xlu0 %364  ;;  %v367_v2 = vpop.permute.xlu1 %366 }
 0x173   : > { %v371_v9 = vsel %vm338_vm15, %v365_v0, %v367_v2 }
 0x174   : > { %v374_v15 = vadd.f32 %v371_v9, %v362_v62 }
 0x176   : > { %v369_v5 = vpop.permute.xlu0 %368  ;;  %v377_v6 = vpop.permute.xlu1 %376 }
 0x177   : > { %v370_v10 = vsel %vm338_vm15, %v367_v2, %v369_v5  ;;  %v372_v11 = vsel %vm338_vm15, %v369_v5, %v365_v0 }
 0x178   : > { %v373_v16 = vadd.f32 %v372_v11, %v361_v61  ;;  %v375_v17 = vadd.f32 %v370_v10, %v363_v63 }
 0x17a   : > { %v379_v18 = vpop.permute.xlu0 %378  ;;  %v381_v19 = vpop.permute.xlu1 %380 }
 0x17b   : > { %v383_v21 = vsel %vm351_vm0, %v377_v6, %v379_v18  ;;  %v382_v23 = vsel %vm351_vm0, %v379_v18, %v381_v19  ;;  %v384_v24 = vsel %vm351_vm0, %v381_v19, %v377_v6 }
 0x17c   : > { %v385_v25 = vadd.f32 %v383_v21, %v373_v16  ;;  %v386_v26 = vadd.f32 %v382_v23, %v374_v15  ;;  %v387_v28 = vadd.f32 %v384_v24, %v375_v17 }
 0x17e   : > { %v388_v32 = vmul.f32 %v385_v25, %v326_v14  ;;  %v389_v27 = vmul.f32 %v386_v26, %v327_v20  ;;  %v390_v33 = vmul.f32 %v387_v28, %v328_v22 }
 0x180   : > { %v391_v34 = vadd.f32 %v388_v32, %v250_v29  ;;  %v392_v35 = vadd.f32 %v389_v27, %v251_v30  ;;  %v393_v36 = vadd.f32 %v390_v33, %v252_v31 }
 0x182   : > { %394 = vst [vmem:[%s236_s25] sm:$0xff] %v391_v34  ;;  %395 = vst [vmem:[%s236_s25 + $0x8] sm:$0xff] %v392_v35 }
 0x183   : > { %396 = vst [vmem:[%s236_s25 + $0x10] sm:$0xff] %v393_v36 }
 0x184   : > { %696 = shalt.err (!%p693_p13)
}
 0x185   : > { %s697_s9 = scalar_lea.hbm %s1081_s30, 384  ;;  %s701_s4 = scalar_lea.hbm %s1128_s3, 768 }
 0x186   : > { %p698_p0 = scmp.ne.s32.totalorder %s1081_s30, %s697_s9  ;;  %p702_p6 = scmp.lt.u32.totalorder %s1081_s30, %s1128_s3 }
 0x187   : > { %p703_p10 = scmp.lt.u32.totalorder %s701_s4, %s697_s9  ;;  %p705_p7 = scmp.lt.u32.totalorder %s697_s9, %s1081_s30 }
 0x188   : > { %p699_p9 = pnand %p698_p0, %p1143_p3 }
 0x189   : > { %p704_p11 = por %p703_p10, %p702_p6 }
 0x18a   : > { %p700_p8 = pneg %p699_p9 }
 0x18b   : > { %p706_p12 = por %p705_p7, %p704_p11 }
 0x18d   : > { %p707_p1 = pnand %p706_p12, %p700_p8 }
 0x18f   : > { %710 = shalt.err (!%p707_p1)
}
 0x190   : > { %554 = dma.vmem_to_hbm [thread:$0]  (%p1143_p3), %s1083_s17, 384, %s1081_s30, %s398_s16  }
 0x191 PF: > { %s424_s8 = sand.u32 1, %s745_s12   ;;  %p1144_p4 = scmp.ne.s32.totalorder %s1135_s24, 0 }
 0x192   : > { %p1145_p2 = scmp.ge.s32.totalorder %s757_s15, 2  ;;  %s425_s7 = scalar_lea.sflag [#allocation4], %s424_s8 }
 0x194   : > { %p568_p5 = pnand %p1145_p2, %p1144_p4 }
 0x196   : > { %740 = dma.done.wait (!%p568_p5), %s425_s7, 384  }
 0x197   : > { %742 = vsyncadd (!%p568_p5), %s425_s7, 4294966912  ;;  %p20_p13 = scmp.ge.s32.totalorder %s810_s18, 4   ;;  %s1146_s12 = smov %s749_s13 }
 0x198   : > { %s1147_s13 = smov %s753_s14  ;;  %s1148_s14 = smov %s822_s21 }
 0x199   : > { %s1149_s15 = smov %s810_s18  ;;  %22 = sbr.rel (!%p20_p13) target bundleno = 8 (0x8), region = 95 }
 0x1a0   :  { %430 = vsyncpa [#allocation3], 1 }
 0x1a1   :  { %432 = vsyncpa [#allocation3 + $0x1], 1 }
 0x1a2   :  { %433 = vsyncpa [#allocation8], 1 }
 0x1a3   :  { %435 = vsyncpa [#allocation8 + $0x1], 1 }
 0x1a4   :  { %436 = vsyncpa [#allocation4], 1 }
 0x1a5   :  { %438 = vsyncpa [#allocation4 + $0x1], 1 }
 0x1a6   :  { %439 = vsyncpa [#allocation5], 1 }
 0x1a7   :  { %441 = vsyncpa [#allocation5 + $0x1], 1 }

</bundles_post_ra>
